<compile_context>
chip_gen: v5e
topology: v5e:2x2
jax: 0.10.0
libtpu: 0.0.40
codegen_flags: <defaults>
</compile_context>

<pallas_src>
import functools

import jax
import jax.numpy as jnp
from jax.experimental import pallas as pl
from jax.experimental.pallas import tpu as pltpu


def _round_up(x: int, m: int) -> int:
    return ((x + m - 1) // m) * m


def _sublane_pack(dtype) -> int:
    # Rows per 8-sublane group: f32 -> 8, bf16 -> 16, int8/fp8 -> 32.
    return 8 * max(1, 4 // jnp.dtype(dtype).itemsize)


def _plan_kn(K: int, N: int, tn: int, tk: int):
    """Padded (Kp, Np) extents and clamped (tk, tn) tiles for the weight."""
    Np = _round_up(N, 128)   # lane-dense output: no masked partial stores
    Kp = _round_up(K, 128)   # MXU-friendly contraction
    tn = min(tn, Np)
    tk = min(tk, Kp)
    Np = _round_up(Np, tn)
    Kp = _round_up(Kp, tk)
    return Kp, Np, tk, tn


def _plan_m(M: int, tm: int, compute_dtype):
    Mp = _round_up(M, _sublane_pack(compute_dtype))
    tm = min(tm, Mp)
    Mp = _round_up(Mp, tm)
    return Mp, tm


# --------------------------------------------------------------------------- #
# Kernels
# --------------------------------------------------------------------------- #
def _linear_kernel_single_k(x_ref, w_ref, b_ref, o_ref):
    """K fits one tile: no accumulator scratch, direct fused epilogue."""
    o_ref[...] = (
        jnp.dot(x_ref[...], w_ref[...], preferred_element_type=jnp.float32)
        + b_ref[...]
    ).astype(o_ref.dtype)


def _linear_kernel_multi_k(x_ref, w_ref, b_ref, o_ref, acc_ref):
    """K split over the innermost grid axis; bias folded into acc init."""
    k = pl.program_id(2)

    @pl.when(k == 0)
    def _init():
        acc_ref[...] = jnp.broadcast_to(b_ref[...], acc_ref.shape)

    acc_ref[...] += jnp.dot(
        x_ref[...], w_ref[...], preferred_element_type=jnp.float32
    )

    @pl.when(k == pl.num_programs(2) - 1)
    def _finalize():
        o_ref[...] = acc_ref[...].astype(o_ref.dtype)


# --------------------------------------------------------------------------- #
# Forward (jitted per static config; weight arrives pre-padded / pre-cast)
# --------------------------------------------------------------------------- #
@functools.partial(
    jax.jit, static_argnames=("out_dim", "tm", "tn", "tk", "compute_dtype")
)
def _linear_forward(x, w_p, b_p, *, out_dim, tm, tn, tk, compute_dtype):
    M, K = x.shape
    Kp, Np = w_p.shape
    out_dtype = x.dtype

    tn = min(tn, Np)
    tk = min(tk, Kp)
    assert Np % tn == 0 and Kp % tk == 0, "weight must be prepared with same tiles"

    Mp, tm = _plan_m(M, tm, compute_dtype)

    # ---- VMEM budget (conservative: triple-buffered weight + f32 acc) ------
    cb = jnp.dtype(compute_dtype).itemsize
    ob = jnp.dtype(out_dtype).itemsize

    def _tile_footprint(tm_, tn_, tk_):
        return (2 * tm_ * tk_ * cb          # x, double-buffered
                + 3 * tk_ * tn_ * cb        # weight, up to 3 buffers
                + 2 * tn_ * 4               # bias (f32)
                + 2 * tm_ * tn_ * ob        # output, double-buffered
                + tm_ * tn_ * 4)            # f32 accumulator

    budget = 40 << 20  # fits every generation incl. v7x (64 MiB physical VMEM)
    while _tile_footprint(tm, tn, tk) > budget:
        if tk > 256 and (tk // 2) % 128 == 0 and Kp % (tk // 2) == 0:
            tk //= 2
        elif tn > 256 and (tn // 2) % 128 == 0 and Np % (tn // 2) == 0:
            tn //= 2
        elif tm > 128 and (tm // 2) % 8 == 0 and Mp % (tm // 2) == 0:
            tm //= 2
        else:
            break
    vmem_limit = int(max(32 << 20, min(48 << 20, 2 * _tile_footprint(tm, tn, tk))))

    num_k = Kp // tk
    n_col_tiles = Np // tn
    n_row_tiles = Mp // tm

    # ---- Activation: cast to compute dtype BEFORE padding (half pad bytes) --
    x_p = jnp.pad(x.astype(compute_dtype), ((0, Mp - M), (0, Kp - K)))

    x_total = Mp * Kp * cb
    w_total = Kp * Np * cb
    o_total = Mp * Np * ob

    if num_k == 1:
        # Single-K fast path: 2D grid (j, i); weight column-slab stays resident
        # in VMEM across the inner batch loop.
        cost = pl.CostEstimate(
            flops=2 * Mp * Np * Kp,
            transcendentals=0,
            bytes_accessed=int(x_total * n_col_tiles + w_total + Np * 4 + o_total),
        )
        out_p = pl.pallas_call(
            _linear_kernel_single_k,
            out_shape=jax.ShapeDtypeStruct((Mp, Np), out_dtype),
            grid_spec=pltpu.PrefetchScalarGridSpec(
                num_scalar_prefetch=0,
                grid=(n_col_tiles, n_row_tiles),
                in_specs=[
                    pl.BlockSpec((tm, tk), lambda j, i: (i, 0)),
                    pl.BlockSpec((tk, tn), lambda j, i: (0, j)),
                    pl.BlockSpec((1, tn), lambda j, i: (0, j)),
                ],
                out_specs=pl.BlockSpec((tm, tn), lambda j, i: (i, j)),
            ),
            compiler_params=pltpu.CompilerParams(
                dimension_semantics=("parallel", "parallel"),
                vmem_limit_bytes=vmem_limit,
            ),
            cost_estimate=cost,
        )(x_p, w_p, b_p)
    else:
        # Multi-K path: 3D grid (j, i, k), K innermost (reduction), f32 acc.
        cost = pl.CostEstimate(
            flops=2 * Mp * Np * Kp,
            transcendentals=0,
            bytes_accessed=int(
                x_total * n_col_tiles + w_total * n_row_tiles + Np * 4 + o_total
            ),
        )
        out_p = pl.pallas_call(
            _linear_kernel_multi_k,
            out_shape=jax.ShapeDtypeStruct((Mp, Np), out_dtype),
            grid_spec=pltpu.PrefetchScalarGridSpec(
                num_scalar_prefetch=0,
                grid=(n_col_tiles, n_row_tiles, num_k),
                in_specs=[
                    pl.BlockSpec((tm, tk), lambda j, i, k: (i, k)),
                    # Deeper weight pipeline for the weight-streaming regime.
                    pl.BlockSpec((tk, tn), lambda j, i, k: (k, j),
                                 pipeline_mode=pl.Buffered(3)),
                    pl.BlockSpec((1, tn), lambda j, i, k: (0, j)),
                ],
                out_specs=pl.BlockSpec((tm, tn), lambda j, i, k: (i, j)),
                scratch_shapes=[pltpu.VMEM((tm, tn), jnp.float32)],
            ),
            compiler_params=pltpu.CompilerParams(
                dimension_semantics=("parallel", "parallel", "arbitrary"),
                vmem_limit_bytes=vmem_limit,
            ),
            cost_estimate=cost,
        )(x_p, w_p, b_p)

    return out_p[:M, :out_dim]


# --------------------------------------------------------------------------- #
# Module wrapper: weight prep is done ONCE here (hoisted out of forward).
# --------------------------------------------------------------------------- #
class PallasLinear:
    """Pallas equivalent of LinearNet.forward: y = x @ W^T + b."""

    def __init__(self, weight, bias, *, tm=256, tn=512, tk=1024,
                 compute_dtype=jnp.bfloat16):
        out_dim, inp_dim = weight.shape
        Kp, Np, tk_eff, tn_eff = _plan_kn(inp_dim, out_dim, tn, tk)

        # One-time transpose + cast + pad of the constant weight / bias.
        w_t = jnp.transpose(weight).astype(compute_dtype)            # (K, N)
        self.w_p = jax.block_until_ready(
            jnp.pad(w_t, ((0, Kp - inp_dim), (0, Np - out_dim))))
        self.b_p = jax.block_until_ready(
            jnp.pad(bias.astype(jnp.float32).reshape(1, -1),
                    ((0, 0), (0, Np - out_dim))))

        self.out_dim = int(out_dim)
        self.tm, self.tn, self.tk = int(tm), int(tn_eff), int(tk_eff)
        self.compute_dtype = compute_dtype

    def __call__(self, x):
        return _linear_forward(
            x, self.w_p, self.b_p,
            out_dim=self.out_dim, tm=self.tm, tn=self.tn, tk=self.tk,
            compute_dtype=self.compute_dtype,
        )


if __name__ == "__main__":
    key = jax.random.PRNGKey(0)
    f32, bf16 = jnp.float32, jnp.bfloat16

    # --- Small LinearNet(32, 16), batch 8: collapses to one grid step -------
    batch, inp_dim, out_dim = 8, 32, 16
    kx, kw, kb = jax.random.split(key, 3)
    bound = 1.0 / (inp_dim ** 0.5)
    w = jax.random.uniform(kw, (out_dim, inp_dim), f32, -bound, bound)
    b = jax.random.uniform(kb, (out_dim,), f32, -bound, bound)
    x = jax.random.normal(kx, (batch, inp_dim), f32)

    # bf16 default path (compare vs a bf16-quantized f32 reference).
    layer = PallasLinear(w, b)
    out = jax.block_until_ready(layer(x))
    ref_bf16 = (x.astype(bf16).astype(f32) @ w.T.astype(bf16).astype(f32)) + b
    assert out.shape == (batch, out_dim)
    assert jnp.allclose(out, ref_bf16, atol=1e-3, rtol=1e-3)

    # Exact f32 path.
    layer_f32 = PallasLinear(w, b, compute_dtype=f32)
    out_f32 = jax.block_until_ready(layer_f32(x))
    assert jnp.allclose(out_f32, x @ w.T + b, atol=1e-5, rtol=1e-5)

    # --- Multi-tile / multi-K sanity check (padding, bias fold, accumulator) -
    B2, K2, N2 = 200, 300, 260
    kx2, kw2, kb2 = jax.random.split(jax.random.PRNGKey(1), 3)
    bound2 = 1.0 / (K2 ** 0.5)
    w2 = jax.random.uniform(kw2, (N2, K2), f32, -bound2, bound2)
    b2 = jax.random.uniform(kb2, (N2,), f32, -bound2, bound2)
    x2 = jax.random.normal(kx2, (B2, K2), f32)

    layer2 = PallasLinear(w2, b2, tm=128, tn=128, tk=128)        # 3 K tiles
    out2 = jax.block_until_ready(layer2(x2))
    ref2 = (x2.astype(bf16).astype(f32) @ w2.T.astype(bf16).astype(f32)) + b2
    assert out2.shape == (B2, N2)
    assert jnp.allclose(out2, ref2, atol=1e-3, rtol=1e-3)

    layer2_f32 = PallasLinear(w2, b2, tm=128, tn=128, tk=128, compute_dtype=f32)
    out2_f32 = jax.block_until_ready(layer2_f32(x2))
    assert jnp.allclose(out2_f32, x2 @ w2.T + b2, atol=1e-4, rtol=1e-4)

    print("KERNEL_OK")
</pallas_src>

<mosaic_0001>
module attributes {stable_mosaic.version = 11 : i64} {
  func.func @_linear_kernel_single_k(%arg0: i32, %arg1: i32, %arg2: memref<16x128xbf16, #tpu.memory_space<vmem>>, %arg3: memref<128x128xbf16, #tpu.memory_space<vmem>>, %arg4: memref<1x128xf32, #tpu.memory_space<vmem>>, %arg5: memref<16x128xf32, #tpu.memory_space<vmem>>) attributes {dimension_semantics = [#tpu.dimension_semantics<parallel>, #tpu.dimension_semantics<parallel>], iteration_bounds = array<i64: 1, 1>, scalar_prefetch = 0 : i64, scratch_operands = 0 : i64, tpu.core_type = #tpu.core_type<tc>, window_params = [{transform_indices = @transform_0, window_bounds = array<i64: 16, 128>}, {transform_indices = @transform_1, window_bounds = array<i64: 128, 128>}, {transform_indices = @transform_2, window_bounds = array<i64: 1, 128>}, {transform_indices = @transform_3, window_bounds = array<i64: 16, 128>}]} {
    %c0 = arith.constant 0 : index
    %c0_0 = arith.constant 0 : index
    %0 = vector.load %arg2[%c0, %c0_0] : memref<16x128xbf16, #tpu.memory_space<vmem>>, vector<16x128xbf16>
    %c0_1 = arith.constant 0 : index
    %c0_2 = arith.constant 0 : index
    %1 = vector.load %arg3[%c0_1, %c0_2] : memref<128x128xbf16, #tpu.memory_space<vmem>>, vector<128x128xbf16>
    %cst = arith.constant dense<0.000000e+00> : vector<16x128xf32>
    %2 = tpu.matmul %0, %1, %cst {dimension_numbers = #tpu.dot_dimension_numbers<[1], [0], [0], [1], [0, 0, 1, 1], [], []>} : vector<16x128xbf16>, vector<128x128xbf16>, vector<16x128xf32> -> vector<16x128xf32>
    %c0_3 = arith.constant 0 : index
    %c0_4 = arith.constant 0 : index
    %3 = vector.load %arg4[%c0_3, %c0_4] : memref<1x128xf32, #tpu.memory_space<vmem>>, vector<1x128xf32>
    %4 = vector.broadcast %3 : vector<1x128xf32> to vector<16x128xf32>
    %5 = arith.addf %2, %4 : vector<16x128xf32>
    %c0_5 = arith.constant 0 : index
    %c0_6 = arith.constant 0 : index
    %6 = vector.load %arg5[%c0_5, %c0_6] : memref<16x128xf32, #tpu.memory_space<vmem>>, vector<16x128xf32>
    tpu.vector_store %arg5[%c0_5, %c0_6], %5 {strides = array<i32>} : memref<16x128xf32, #tpu.memory_space<vmem>>, vector<16x128xf32>,
    return
  }
  func.func @transform_0(%arg0: i32, %arg1: i32) -> (i32, i32) {
    %c0_i32 = arith.constant 0 : i32
    %c0_i32_0 = arith.constant 0 : i32
    return %arg1, %c0_i32 : i32, i32
  }
  func.func @transform_1(%arg0: i32, %arg1: i32) -> (i32, i32) {
    %c0_i32 = arith.constant 0 : i32
    %c0_i32_0 = arith.constant 0 : i32
    return %c0_i32, %arg0 : i32, i32
  }
  func.func @transform_2(%arg0: i32, %arg1: i32) -> (i32, i32) {
    %c0_i32 = arith.constant 0 : i32
    %c0_i32_0 = arith.constant 0 : i32
    return %c0_i32, %arg0 : i32, i32
  }
  func.func @transform_3(%arg0: i32, %arg1: i32) -> (i32, i32) {
    %c0_i32 = arith.constant 0 : i32
    return %arg1, %arg0 : i32, i32
  }
}

</mosaic_0001>

<bundles_post_ra>
// kernel: _linear_forward.1
= control target key start
LH: loop header
LB: loop body
LE: loop exit
PB: predicated region body
PF: predicated region fallthrough
CT: control target
= control target key end

     0   :  { %8 = vsyncpa [#allocation3], 0  ;;  %s202_s15 = smov [#allocation2]   ;;  %s203_s17 = smov 64   ;;  %s240_s0 = inlined_call_operand.vmem [shape: bf16[16,128], index: 0, kind: input, shape index: {}]   ;;  %s241_s1 = inlined_call_operand.hbm [shape: bf16[128,128], index: 1, kind: input, shape index: {}]   ;;  %s242_s2 = inlined_call_operand.vmem [shape: f32[1,128], index: 2, kind: input, shape index: {}]   ;;  %s243_s3 = inlined_call_operand.vmem [shape: f32[16,128], index: 3, kind: output, shape index: {}]  }
   0x1   :  { %s15_s14 = sshll.u32 %s241_s1, 4  ;;  %s17_s16 = sshll.u32 %s202_s15, 4  ;;  %s16_s14 = int_to_ptr.hbm [resolvable:$true] %s15_s14  ;;  %s18_s16 = int_to_ptr.vmem [resolvable:$true] %s17_s16 }
   0x2   :  { %s204_s18 = smov 4  }
   0x3   :  { %23 = dma.hbm_to_vmem [thread:$0]  %s16_s14, 1024, %s18_s16, [#allocation3], %s203_s17, %s203_s17, %s204_s18  }
   0x4   :  { %200 = dma.done.wait [#allocation3], 1024  }
   0x5   :  { %201 = vsyncadd [#allocation3], 4294966272  ;;  %v171_v0 = vld [vmem:[#allocation2 + $0x38] sm:$0xff]  ;;  %v170_v1 = vld [vmem:[#allocation2 + $0x30] sm:$0xff] }
   0x6   :  { %106 = vmatpush.bf16.msra.mxu0 %v171_v0  ;;  %v169_v2 = vld [vmem:[#allocation2 + $0x28] sm:$0xff]  ;;  %v168_v3 = vld [vmem:[#allocation2 + $0x20] sm:$0xff]  ;;  %v167_v4 = vld [vmem:[#allocation2 + $0x18] sm:$0xff] }
   0x7   :  { %v166_v5 = vld [vmem:[#allocation2 + $0x10] sm:$0xff]  ;;  %v165_v6 = vld [vmem:[#allocation2 + $0x8] sm:$0xff]  ;;  %v164_v7 = vld [vmem:[#allocation2] sm:$0xff] }
   0x8   :  { %v163_v8 = vld [vmem:[%s240_s0] sm:$0xff] }
   0x9   :  { %v175_v9 = vld [vmem:[%s242_s2] ss:$0 sm:$0xff] }
   0xa   :  { %107 = vmatpush.bf16.msra.mxu0 %v170_v1 }
   0xe   :  { %108 = vmatpush.bf16.msra.mxu0 %v169_v2 }
  0x12   :  { %109 = vmatpush.bf16.msra.mxu0 %v168_v3 }
  0x16   :  { %110 = vmatpush.bf16.msra.mxu0 %v167_v4 }
  0x1a   :  { %111 = vmatpush.bf16.msra.mxu0 %v166_v5 }
  0x1e   :  { %112 = vmatpush.bf16.msra.mxu0 %v165_v6 }
  0x22   :  { %113 = vmatpush.bf16.msra.mxu0 %v164_v7 }
  0x25   :  { %114 = vmatmul.bf16.vlgmr.msra.gmra.mxu0 %v163_v8 }
  0xa2   :  { %v115_v10 = vpop.f32.mrf.mxu0 }
  0xa3   :  { %v116_v11 = vadd.f32 %v175_v9, %v115_v10 }
  0xa5   :  { %120 = vst [vmem:[%s243_s3] sm:$0xff] %v116_v11 }
  0xaa   :  { %v117_v12 = vpop.f32.mrf.mxu0 }
  0xab   :  { %v118_v13 = vadd.f32 %v175_v9, %v117_v12 }
  0xad   :  { %121 = vst [vmem:[%s243_s3 + $0x8] sm:$0xff] %v118_v13 }
  0xae   :  { %126 = vsyncpa [#allocation3], 1 }

</bundles_post_ra>
